<compile_context>
chip_gen: v7x
topology: tpu7x:2x2x1
jax: 0.10.0
libtpu: 0.0.40
codegen_flags: <defaults>
</compile_context>

<pallas_src>
import functools

import jax
import jax.numpy as jnp
from jax.experimental import pallas as pl
from jax.experimental.pallas import tpu as pltpu


def combiner_kernel(z_ref, b_ref, h_ref, w_zb_ref, w_head_ref, b_head_ref, out_ref):
    """Fused Combiner forward over one lane-tile of samples.

    z_ref      : (2, tile_n)             rows = [z0 ; z1]          (feature-major)
    b_ref      : (2, tile_n)             rows = [b0 ; b1]
    h_ref      : (rnn_dim, tile_n)       RNN hidden state
    w_zb_ref   : (rnn_dim, 8)            cols = [wz0 wz1 wb0 wb1 bz bb 0 0]
    w_head_ref : (2*z_dim, rnn_dim)      0.33 * [Wloc ; Wscale]^T
    b_head_ref : (2*z_dim, 1)            [bloc ; bscale]^T
    out_ref    : (2*z_dim, tile_n)       rows = [loc ; scale] (post-softplus)
    """
    w_zb = w_zb_ref[...]
    z = z_ref[...]
    b = b_ref[...]

    # K=2 projections on the VPU as broadcast FMAs (skip the MXU).
    # Lane broadcasts land on loop-invariant weight columns; z/b rows are cheap
    # sublane broadcasts.
    hz = jnp.maximum(
        w_zb[:, 0:1] * z[0:1, :] + w_zb[:, 1:2] * z[1:2, :] + w_zb[:, 4:5], 0.0)
    hb = jnp.maximum(
        w_zb[:, 2:3] * b[0:1, :] + w_zb[:, 3:4] * b[1:2, :] + w_zb[:, 5:6], 0.0)

    # 0.33 is pre-folded into the head weights, so just sum here.
    h_sum = hz + hb + h_ref[...]

    # Fused loc|scale head: one lane-dense MXU matmul, one bias add, one
    # softplus, one unmasked store.
    pre = (jnp.dot(w_head_ref[...], h_sum, preferred_element_type=jnp.float32)
           + b_head_ref[...])

    # Numerically stable softplus: log(1 + exp(x)) == logaddexp(x, 0).
    out_ref[...] = jnp.logaddexp(pre, 0.0)


def pack_params(params):
    """Pack the 8 Linear params into 3 transposed slabs (done once, offline).

    Returns:
      w_zb   : (rnn_dim, 8)          cols = [wz0 wz1 wb0 wb1 bz bb 0 0]
      w_head : (2*z_dim, rnn_dim)    0.33 folded into the weights (exact up to
                                     f32 rounding)
      b_head : (2*z_dim, 1)
    """
    rnn_dim = params["wz"].shape[1]
    w_zb = jnp.concatenate(
        [params["wz"].T, params["wb"].T, params["bz"].T, params["bb"].T,
         jnp.zeros((rnn_dim, 2), jnp.float32)], axis=1)
    w_head = 0.33 * jnp.concatenate([params["wloc"], params["wscale"]], axis=1).T
    b_head = jnp.concatenate([params["bloc"], params["bscale"]], axis=1).T
    return w_zb, w_head, b_head


@functools.partial(jax.jit, static_argnames=("tile_n",))
def combiner_forward_seq(z_t, b_t, h_t, w_zb, w_head, b_head, *, tile_n=256):
    """Run the Combiner over a whole sequence in one pallas_call.

    Inputs are feature-major; the lane axis is samples N = batch * T:
      z_t (2, N), b_t (2, N), h_t (rnn_dim, N), plus packed params.

    Returns the packed (2*z_dim, N) [loc ; scale] slab (post-softplus).  It is
    kept packed / lane-dense for downstream consumers; split lazily at the
    point of use instead of paying two extra HBM slice ops per call.
    """
    assert tile_n % 128 == 0
    rnn_dim, n = h_t.shape
    two_z = w_head.shape[0]

    # Pad the sample axis up to a multiple of tile_n (no-op when already aligned).
    n_pad = pl.cdiv(n, tile_n) * tile_n
    if n_pad != n:
        pad = ((0, 0), (0, n_pad - n))
        z_t = jnp.pad(z_t, pad)
        b_t = jnp.pad(b_t, pad)
        h_t = jnp.pad(h_t, pad)

    out = pl.pallas_call(
        combiner_kernel,
        out_shape=jax.ShapeDtypeStruct((two_z, n_pad), jnp.float32),
        grid=(n_pad // tile_n,),
        in_specs=[
            pl.BlockSpec((2, tile_n), lambda i: (0, i)),         # z (streamed)
            pl.BlockSpec((2, tile_n), lambda i: (0, i)),         # b (streamed)
            pl.BlockSpec((rnn_dim, tile_n), lambda i: (0, i)),   # h_rnn (streamed)
            pl.BlockSpec((rnn_dim, 8), lambda i: (0, 0)),        # w_zb   (VMEM-resident)
            pl.BlockSpec((two_z, rnn_dim), lambda i: (0, 0)),    # w_head (VMEM-resident)
            pl.BlockSpec((two_z, 1), lambda i: (0, 0)),          # b_head (VMEM-resident)
        ],
        out_specs=pl.BlockSpec((two_z, tile_n), lambda i: (0, i)),
        compiler_params=pltpu.CompilerParams(
            dimension_semantics=("parallel",)),  # shards across v7x's 2 TCs
    )(z_t, b_t, h_t, w_zb, w_head, b_head)

    if n_pad != n:
        out = out[:, :n]
    return out


def init_params(key, z_dim, rnn_dim):
    """Deterministic init mimicking nn.Linear default (uniform +/- 1/sqrt(fan_in)).

    Weights are stored as (in_features, out_features) — transposed vs PyTorch.
    Biases are stored as (1, out_features).
    """
    ks = jax.random.split(key, 8)

    def lin(kw, kb, fan_in, fan_out):
        bound = 1.0 / jnp.sqrt(jnp.float32(fan_in))
        w = jax.random.uniform(kw, (fan_in, fan_out), jnp.float32, -bound, bound)
        b = jax.random.uniform(kb, (1, fan_out), jnp.float32, -bound, bound)
        return w, b

    wz, bz = lin(ks[0], ks[1], 2, rnn_dim)
    wb, bb = lin(ks[2], ks[3], 2, rnn_dim)
    wloc, bloc = lin(ks[4], ks[5], rnn_dim, z_dim)
    wscale, bscale = lin(ks[6], ks[7], rnn_dim, z_dim)
    return dict(wz=wz, bz=bz, wb=wb, bb=bb,
                wloc=wloc, bloc=bloc, wscale=wscale, bscale=bscale)


def reference_forward(z, b, h_rnn, params):
    """Pure-JAX reference with the original (batch-major, unpacked) semantics."""
    hz = jax.nn.relu(z @ params["wz"] + params["bz"])
    hb = jax.nn.relu(b @ params["wb"] + params["bb"])
    h_combined = 0.33 * (hz + hb + h_rnn)
    loc = jax.nn.softplus(h_combined @ params["wloc"] + params["bloc"])
    scale = jax.nn.softplus(h_combined @ params["wscale"] + params["bscale"])
    return loc, scale


if __name__ == "__main__":
    batch, seq_len, z_dim, rnn_dim = 8, 64, 4, 32
    n = batch * seq_len  # 512 samples -> 2 grid steps at tile_n=256

    key = jax.random.PRNGKey(0)
    k_params, k_z, k_b, k_h = jax.random.split(key, 4)

    params = init_params(k_params, z_dim, rnn_dim)

    # Batch-major "sequence" inputs, as the surrounding rollout would produce.
    z_seq = jax.random.normal(k_z, (n, 2), jnp.float32)
    b_seq = jax.random.normal(k_b, (n, 2), jnp.float32)
    h_seq = jax.random.normal(k_h, (n, rnn_dim), jnp.float32)

    # One-time per-sequence layout conversion to feature-major (lane = sample).
    # TODO(synk): have the upstream RNN emit h_rnn feature-major directly so
    # even this per-sequence transpose disappears.
    z_t = z_seq.T
    b_t = b_seq.T
    h_t = h_seq.T

    w_zb, w_head, b_head = pack_params(params)

    out = combiner_forward_seq(z_t, b_t, h_t, w_zb, w_head, b_head, tile_n=256)
    jax.block_until_ready(out)

    # Split only here, in the correctness check (downstream should consume packed).
    loc = out[:z_dim, :].T
    scale = out[z_dim:, :].T

    loc_ref, scale_ref = reference_forward(z_seq, b_seq, h_seq, params)
    assert jnp.allclose(loc, loc_ref, atol=1e-5, rtol=1e-5)
    assert jnp.allclose(scale, scale_ref, atol=1e-5, rtol=1e-5)

    print("KERNEL_OK")
</pallas_src>

<mosaic_0001>
module attributes {stable_mosaic.version = 11 : i64} {
  func.func @combiner_kernel(%arg0: i32, %arg1: memref<2x256xf32, #tpu.memory_space<vmem>>, %arg2: memref<2x256xf32, #tpu.memory_space<vmem>>, %arg3: memref<32x256xf32, #tpu.memory_space<vmem>>, %arg4: memref<32x8xf32, #tpu.memory_space<vmem>>, %arg5: memref<8x32xf32, #tpu.memory_space<vmem>>, %arg6: memref<8x1xf32, #tpu.memory_space<vmem>>, %arg7: memref<8x256xf32, #tpu.memory_space<vmem>>) attributes {dimension_semantics = [#tpu.dimension_semantics<parallel>], iteration_bounds = array<i64: 2>, scalar_prefetch = 0 : i64, scratch_operands = 0 : i64, tpu.core_type = #tpu.core_type<tc>, window_params = [{transform_indices = @transform_0, window_bounds = array<i64: 2, 256>}, {transform_indices = @transform_1, window_bounds = array<i64: 2, 256>}, {transform_indices = @transform_2, window_bounds = array<i64: 32, 256>}, {pipeline_mode = #tpu.pipeline_mode<synchronous>, transform_indices = @transform_3, window_bounds = array<i64: 32, 8>}, {pipeline_mode = #tpu.pipeline_mode<synchronous>, transform_indices = @transform_4, window_bounds = array<i64: 8, 32>}, {pipeline_mode = #tpu.pipeline_mode<synchronous>, transform_indices = @transform_5, window_bounds = array<i64: 8, 1>}, {transform_indices = @transform_6, window_bounds = array<i64: 8, 256>}]} {
    %c0 = arith.constant 0 : index
    %c0_0 = arith.constant 0 : index
    %0 = vector.load %arg4[%c0, %c0_0] : memref<32x8xf32, #tpu.memory_space<vmem>>, vector<32x8xf32>
    %c0_1 = arith.constant 0 : index
    %c0_2 = arith.constant 0 : index
    %1 = vector.load %arg1[%c0_1, %c0_2] : memref<2x256xf32, #tpu.memory_space<vmem>>, vector<2x256xf32>
    %c0_3 = arith.constant 0 : index
    %c0_4 = arith.constant 0 : index
    %2 = vector.load %arg2[%c0_3, %c0_4] : memref<2x256xf32, #tpu.memory_space<vmem>>, vector<2x256xf32>
    %3 = vector.extract_strided_slice %0 {offsets = [0, 0], sizes = [32, 1], strides = [1, 1]} : vector<32x8xf32> to vector<32x1xf32>
    %4 = vector.extract_strided_slice %1 {offsets = [0, 0], sizes = [1, 256], strides = [1, 1]} : vector<2x256xf32> to vector<1x256xf32>
    %5 = vector.broadcast %3 : vector<32x1xf32> to vector<32x256xf32>
    %6 = vector.broadcast %4 : vector<1x256xf32> to vector<32x256xf32>
    %7 = arith.mulf %5, %6 : vector<32x256xf32>
    %8 = vector.extract_strided_slice %0 {offsets = [0, 1], sizes = [32, 1], strides = [1, 1]} : vector<32x8xf32> to vector<32x1xf32>
    %9 = vector.extract_strided_slice %1 {offsets = [1, 0], sizes = [1, 256], strides = [1, 1]} : vector<2x256xf32> to vector<1x256xf32>
    %10 = vector.broadcast %8 : vector<32x1xf32> to vector<32x256xf32>
    %11 = vector.broadcast %9 : vector<1x256xf32> to vector<32x256xf32>
    %12 = arith.mulf %10, %11 : vector<32x256xf32>
    %13 = arith.addf %7, %12 : vector<32x256xf32>
    %14 = vector.extract_strided_slice %0 {offsets = [0, 4], sizes = [32, 1], strides = [1, 1]} : vector<32x8xf32> to vector<32x1xf32>
    %15 = vector.broadcast %14 : vector<32x1xf32> to vector<32x256xf32>
    %16 = arith.addf %13, %15 : vector<32x256xf32>
    %cst = arith.constant 0.000000e+00 : f32
    %17 = vector.broadcast %cst : f32 to vector<32x256xf32>
    %18 = arith.maximumf %16, %17 : vector<32x256xf32>
    %19 = vector.extract_strided_slice %0 {offsets = [0, 2], sizes = [32, 1], strides = [1, 1]} : vector<32x8xf32> to vector<32x1xf32>
    %20 = vector.extract_strided_slice %2 {offsets = [0, 0], sizes = [1, 256], strides = [1, 1]} : vector<2x256xf32> to vector<1x256xf32>
    %21 = vector.broadcast %19 : vector<32x1xf32> to vector<32x256xf32>
    %22 = vector.broadcast %20 : vector<1x256xf32> to vector<32x256xf32>
    %23 = arith.mulf %21, %22 : vector<32x256xf32>
    %24 = vector.extract_strided_slice %0 {offsets = [0, 3], sizes = [32, 1], strides = [1, 1]} : vector<32x8xf32> to vector<32x1xf32>
    %25 = vector.extract_strided_slice %2 {offsets = [1, 0], sizes = [1, 256], strides = [1, 1]} : vector<2x256xf32> to vector<1x256xf32>
    %26 = vector.broadcast %24 : vector<32x1xf32> to vector<32x256xf32>
    %27 = vector.broadcast %25 : vector<1x256xf32> to vector<32x256xf32>
    %28 = arith.mulf %26, %27 : vector<32x256xf32>
    %29 = arith.addf %23, %28 : vector<32x256xf32>
    %30 = vector.extract_strided_slice %0 {offsets = [0, 5], sizes = [32, 1], strides = [1, 1]} : vector<32x8xf32> to vector<32x1xf32>
    %31 = vector.broadcast %30 : vector<32x1xf32> to vector<32x256xf32>
    %32 = arith.addf %29, %31 : vector<32x256xf32>
    %cst_5 = arith.constant 0.000000e+00 : f32
    %33 = vector.broadcast %cst_5 : f32 to vector<32x256xf32>
    %34 = arith.maximumf %32, %33 : vector<32x256xf32>
    %35 = arith.addf %18, %34 : vector<32x256xf32>
    %c0_6 = arith.constant 0 : index
    %c0_7 = arith.constant 0 : index
    %36 = vector.load %arg3[%c0_6, %c0_7] : memref<32x256xf32, #tpu.memory_space<vmem>>, vector<32x256xf32>
    %37 = arith.addf %35, %36 : vector<32x256xf32>
    %c0_8 = arith.constant 0 : index
    %c0_9 = arith.constant 0 : index
    %38 = vector.load %arg5[%c0_8, %c0_9] : memref<8x32xf32, #tpu.memory_space<vmem>>, vector<8x32xf32>
    %cst_10 = arith.constant dense<0.000000e+00> : vector<8x256xf32>
    %39 = tpu.matmul %38, %37, %cst_10 {dimension_numbers = #tpu.dot_dimension_numbers<[1], [0], [0], [1], [0, 0, 1, 1], [], []>} : vector<8x32xf32>, vector<32x256xf32>, vector<8x256xf32> -> vector<8x256xf32>
    %c0_11 = arith.constant 0 : index
    %c0_12 = arith.constant 0 : index
    %40 = vector.load %arg6[%c0_11, %c0_12] : memref<8x1xf32, #tpu.memory_space<vmem>>, vector<8x1xf32>
    %41 = vector.broadcast %40 : vector<8x1xf32> to vector<8x256xf32>
    %42 = arith.addf %39, %41 : vector<8x256xf32>
    %cst_13 = arith.constant 0.000000e+00 : f32
    %43 = vector.broadcast %cst_13 : f32 to vector<8x256xf32>
    %44 = arith.maximumf %42, %43 : vector<8x256xf32>
    %45 = vector.broadcast %cst_13 : f32 to vector<8x256xf32>
    %46 = arith.subf %42, %45 : vector<8x256xf32>
    %47 = arith.cmpf one, %46, %46 : vector<8x256xf32>
    %48 = vector.broadcast %cst_13 : f32 to vector<8x256xf32>
    %49 = arith.addf %42, %48 : vector<8x256xf32>
    %50 = math.absf %46 : vector<8x256xf32>
    %cst_14 = arith.constant 0.000000e+00 : f32
    %51 = vector.broadcast %cst_14 : f32 to vector<8x256xf32>
    %52 = arith.subf %51, %50 : vector<8x256xf32>
    %53 = math.exp %52 : vector<8x256xf32>
    %54 = math.log1p %53 : vector<8x256xf32>
    %55 = arith.addf %44, %54 : vector<8x256xf32>
    %56 = arith.select %47, %49, %55 : vector<8x256xi1>, vector<8x256xf32>
    %c0_15 = arith.constant 0 : index
    %c0_16 = arith.constant 0 : index
    %57 = vector.load %arg7[%c0_15, %c0_16] : memref<8x256xf32, #tpu.memory_space<vmem>>, vector<8x256xf32>
    tpu.vector_store %arg7[%c0_15, %c0_16], %56 {strides = array<i32>} : memref<8x256xf32, #tpu.memory_space<vmem>>, vector<8x256xf32>,
    return
  }
  func.func @transform_0(%arg0: i32) -> (i32, i32) {
    %c0_i32 = arith.constant 0 : i32
    %c0_i32_0 = arith.constant 0 : i32
    return %c0_i32, %arg0 : i32, i32
  }
  func.func @transform_1(%arg0: i32) -> (i32, i32) {
    %c0_i32 = arith.constant 0 : i32
    %c0_i32_0 = arith.constant 0 : i32
    return %c0_i32, %arg0 : i32, i32
  }
  func.func @transform_2(%arg0: i32) -> (i32, i32) {
    %c0_i32 = arith.constant 0 : i32
    %c0_i32_0 = arith.constant 0 : i32
    return %c0_i32, %arg0 : i32, i32
  }
  func.func @transform_3(%arg0: i32) -> (i32, i32) {
    %c0_i32 = arith.constant 0 : i32
    %c0_i32_0 = arith.constant 0 : i32
    %c0_i32_1 = arith.constant 0 : i32
    return %c0_i32, %c0_i32_0 : i32, i32
  }
  func.func @transform_4(%arg0: i32) -> (i32, i32) {
    %c0_i32 = arith.constant 0 : i32
    %c0_i32_0 = arith.constant 0 : i32
    %c0_i32_1 = arith.constant 0 : i32
    return %c0_i32, %c0_i32_0 : i32, i32
  }
  func.func @transform_5(%arg0: i32) -> (i32, i32) {
    %c0_i32 = arith.constant 0 : i32
    %c0_i32_0 = arith.constant 0 : i32
    %c0_i32_1 = arith.constant 0 : i32
    return %c0_i32, %c0_i32_0 : i32, i32
  }
  func.func @transform_6(%arg0: i32) -> (i32, i32) {
    %c0_i32 = arith.constant 0 : i32
    %c0_i32_0 = arith.constant 0 : i32
    return %c0_i32, %arg0 : i32, i32
  }
}

</mosaic_0001>

<bundles_post_ra>
// kernel: combiner_forward_seq.1
= control target key start
LH: loop header
LB: loop body
LE: loop exit
PB: predicated region body
PF: predicated region fallthrough
CT: control target
= control target key end

     0   :  { %11 = vsyncpa [#allocation3], 0  ;;  %s1351_s0 = inlined_call_operand.vmem [shape: f32[2,512], index: 0, kind: input, shape index: {}]   ;;  %s1352_s1 = inlined_call_operand.vmem [shape: f32[2,512], index: 1, kind: input, shape index: {}]   ;;  %s1353_s2 = inlined_call_operand.hbm [shape: f32[32,512], index: 2, kind: input, shape index: {}]   ;;  %s1354_s3 = inlined_call_operand.vmem [shape: f32[32,8], index: 3, kind: input, shape index: {}]   ;;  %s1355_s4 = inlined_call_operand.vmem [shape: f32[8,32], index: 4, kind: input, shape index: {}]   ;;  %s1356_s5 = inlined_call_operand.vmem [shape: f32[8,1], index: 5, kind: input, shape index: {}]   ;;  %s1357_s6 = inlined_call_operand.hbm [shape: f32[8,512], index: 6, kind: output, shape index: {}]  }
   0x1   :  { %13 = vsyncpa [#allocation3 + $0x1], 0 }
   0x2   :  { %14 = vsyncpa [#allocation4], 0 }
   0x3   :  { %16 = vsyncpa [#allocation4 + $0x1], 0  ;;  %s1085_s21 = smov 0   ;;  %s1087_s22 = smov 0  }
   0x4   :  { %s1089_s23 = smov 0   ;;  %s1091_s24 = smov 0  }
   0x5 LB: > { %s1106_s25 = sadd.s32 4294967295, %s1036_s24   ;;  %s829_s26 = sadd.s32 4294967294, %s1036_s24   ;;  %s1036_s24 = sphi %s1091_s24, %s1371_s24   ;;  %s1032_s23 = sphi %s1089_s23, %s1370_s23   ;;  %s1028_s22 = sphi %s1087_s22, %s1369_s22   ;;  %s1024_s21 = sphi %s1085_s21, %s1368_s21  }
   0x6   : > { %s1110_s27 = sadd.s32 1, %s1036_s24   ;;  %s81_s28 = sadd.s32 1, %s1032_s23 }
   0x7   : > { %s78_s29 = ssub.s32 %s1036_s24, %s1110_s27  ;;  %p88_p0 = scmp.ne.s32.totalorder %s1032_s23, %s1028_s22 }
   0x8   : > { %p79_p1 = scmp.eq.s32.totalorder %s78_s29, 0  ;;  %p89_p2 = scmp.eq.s32.totalorder %s1036_s24, 0 }
   0x9   : > { %p94_p3 = scmp.ne.s32.totalorder %s1028_s22, %s1024_s21  ;;  %p95_p4 = scmp.eq.s32.totalorder %s1106_s25, 0 }
   0xa   : > { %s1122_s30 = scalar_select %p79_p1, %s1032_s23, %s81_s28  }
   0xb   : > { %p1124_p5 = por %p89_p2, %p88_p0  ;;  %p1128_p6 = por %p95_p4, %p94_p3 }
   0xc   : > { %p181_p7 = scmp.eq.s32.totalorder %s1106_s25, 1  ;;  %p187_p8 = scmp.eq.s32.totalorder %s829_s26, 1 }
   0xd   : > { %p870_p10 = scmp.lt.s32.totalorder %s1036_s24, 2  ;;  %s234_s11 = sand.u32 1, %s1032_s23  }
   0xe   : > { %p1135_p11 = por %p181_p7, %p88_p0  ;;  %p1139_p12 = por %p187_p8, %p94_p3 }
   0xf   : > { %s848_s12 = sshll.u32 %s1036_s24, 8  ;;  %s832_s13 = sshll.u32 %s234_s11, 6 }
  0x10   : > { %s1361_s9 = scalar_select %p1135_p11, 1, 0 }
  0x11   : > { %s1362_s10 = scalar_select %p1139_p12, 1, 0 }
  0x12   : > { %s1148_s16 = scalar_lea.hbm %s1353_s2, %s848_s12  ;;  %s238_s17 = scalar_lea.vmem [#allocation2], %s832_s13 }
  0x13   : > { %s245_s18 = sshll.u32 %s238_s17, 4  ;;  %p1152_p13 = pnand %p870_p10, %p1124_p5  ;;  %s1156_s18 = int_to_ptr.vmem [resolvable:$true] %s245_s18 }
  0x14   : > { %s1159_s20 = scalar_lea.sflag [#allocation3], %s234_s11  ;;  %s940_s26 = scalar_lea.hbm %s1148_s16, 1024 }
  0x15   : > { %p941_p1 = scmp.ne.s32.totalorder %s1148_s16, %s940_s26  ;;  %p942_p2 = pneg %p1152_p13 }
  0x16   : > { %s945_s7 = scalar_lea.hbm %s1353_s2, 2048  ;;  %p946_p5 = scmp.lt.u32.totalorder %s1148_s16, %s1353_s2 }
  0x17   : > { %p943_p3 = pnand %p942_p2, %p941_p1  ;;  %p947_p7 = scmp.lt.u32.totalorder %s945_s7, %s940_s26 }
  0x18   : > { %p949_p10 = scmp.lt.u32.totalorder %s940_s26, %s1148_s16 }
  0x19   : > { %p944_p4 = pneg %p943_p3  ;;  %p948_p8 = por %p947_p7, %p946_p5 }
  0x1b   : > { %p950_p9 = por %p949_p10, %p948_p8 }
  0x1d   : > { %p951_p0 = pnand %p950_p9, %p944_p4 }
  0x1f   : > { %954 = shalt.err (!%p951_p0)
}
  0x20   : > { %s955_s11 = scalar_lea.vmem %s1156_s18, 1024  ;;  %s1038_s14 = smov [#allocation2]  }
  0x21   : > { %p956_p1 = scmp.ne.s32.totalorder %s1156_s18, %s955_s11  ;;  %s960_s15 = sshll.u32 %s1038_s14, 4  ;;  %s961_s15 = int_to_ptr.vmem [resolvable:$false] %s960_s15 }
  0x22   : > { %s962_s17 = scalar_lea.vmem %s961_s15, 2048  ;;  %p963_p11 = scmp.lt.s32.totalorder %s1156_s18, %s961_s15 }
  0x23   : > { %p958_p3 = pnand %p956_p1, %p942_p2  ;;  %p964_p5 = scmp.lt.s32.totalorder %s962_s17, %s955_s11 }
  0x25   : > { %p959_p12 = pneg %p958_p3  ;;  %p965_p7 = por %p964_p5, %p963_p11 }
  0x27   : > { %p966_p8 = pnand %p965_p7, %p959_p12 }
  0x29   : > { %969 = shalt.err (!%p966_p8)
}
  0x2a   : > { %s1039_s26 = smov 512   ;;  %s1040_s28 = smov 256  }
  0x2b   : > { %s1041_s29 = smov 16   ;;  %p253_p9 = scmp.lt.s32.totalorder %s1036_s24, 3 }
  0x2c   : > { %865 = dma.hbm_to_vmem [thread:$0]  (!%p1152_p13), %s1148_s16, 1024, %s1156_s18, %s1159_s20, %s1039_s26, %s1040_s28, %s1041_s29  }
  0x2d   : > { %p1364_p0 = scmp.ge.s32.totalorder %s1036_s24, 1 }
  0x2f   : > { %p254_p2 = pnand %p1364_p0, %p253_p9 }
  0x30   : > { %s1191_s7 = sand.u32 (!%p254_p2), 1, %s1028_s22  }
  0x31   : > { %257 = sbr.rel (%p254_p2) target bundleno = 532 (0x214), region = 44  ;;  %s836_s12 = sshll.u32 (!%p254_p2), %s1191_s7, 6 }
  0x32   : > { %s260_s13 = scalar_lea.sflag (!%p254_p2), [#allocation3], %s1191_s7  ;;  %s1195_s11 = scalar_lea.vmem (!%p254_p2), [#allocation2], %s836_s12 }
  0x38   : > { %1015 = dma.done.wait (%p1128_p6), %s260_s13, 1024  }
  0x39   : > { %1017 = vsyncadd (%p1128_p6), %s260_s13, 4294966272  ;;  %v1042_v0 = vmov 1   ;;  %v1043_v1 = vmov 0   ;;  %v316_v2 = vld [vmem:[%s1354_s3] sm:$0xff]  ;;  %v317_v3 = vld [vmem:[%s1354_s3 + $0x8] sm:$0xff]  ;;  %v1044_v4 = vmov 2   ;;  %v343_v22 = vlaneseq }
  0x3a   : > { %915 = vset.pattern.permute.xlu1 %v1042_v0  ;;  %914 = vset.pattern.permute.xlu0 %v1043_v1  ;;  %v318_v5 = vld [vmem:[%s1354_s3 + $0x10] sm:$0xff]  ;;  %v1045_v6 = vmov 3   ;;  %v1046_v7 = vmov 4   ;;  %v319_v8 = vld [vmem:[%s1354_s3 + $0x18] sm:$0xff]  ;;  %v1047_v9 = vmov 5   ;;  %v1048_v10 = vmov 0.0  }
  0x3b   : > { %370 = vperm.xlu1 %915, %v316_v2   ;;  %324 = vperm.xlu0 %914, %v316_v2   ;;  %v601_v11 = vld [vmem:[%s1356_s5] sm:$0xff]  ;;  %s838_s29 = sshll.u32 %s1106_s25, 1  ;;  %v344_v24 = vshrl.u32 %v343_v22, 7  ;;  %vm607_vm0 = vcmask 261120   ;;  %s849_s17 = sshll.u32 %s1106_s25, 8 }
  0x3c   : > { %675 = vmatprep.mubr.f32.mxu0 %v1048_v10  ;;  %p303_p6 = scmp.lt.s32.totalorder %s838_s29, 3  ;;  %s1307_s13 = scalar_lea.hbm %s1357_s6, %s849_s17 }
  0x3d   : > { %v387_v26 = vsub.s32 1, %v344_v24  ;;  %v391_v27 = vsub.s32 3, %v344_v24  ;;  %v345_v28 = vsub.s32 0, %v344_v24  ;;  %v349_v29 = vsub.s32 2, %v344_v24  ;;  %s721_s25 = scalar_lea.sflag [#allocation4], %s1191_s7  ;;  %p1365_p12 = scmp.ne.s32.totalorder %s1361_s9, 0 }
  0x3e   : > { %s1373_s29 = smov (!%p303_p6, %s838_s29), 3 }
  0x3f   : > { %374 = vperm.xlu1 %915, %v317_v3   ;;  %329 = vperm.xlu0 %914, %v317_v3   ;;  %s839_s12 = sshll.u32 %s1373_s29, 1 }
  0x40   : > { %s312_s18 = scalar_lea.vmem %s1352_s1, %s839_s12  ;;  %s306_s8 = scalar_lea.vmem %s1351_s0, %s839_s12 }
  0x41   : > { %v321_v30 = vld [vmem:[%s312_s18] sm:$0xf]  ;;  %s1049_s18 = smov [#allocation5]  }
  0x42   : > { %v320_v32 = vld [vmem:[%s306_s8] sm:$0xf]  ;;  %v471_v34 = vrot.slane %v321_v30, %v345_v28  ;;  %v475_v35 = vrot.slane %v321_v30, %v349_v29  ;;  %v513_v36 = vrot.slane %v321_v30, %v387_v26  ;;  %v517_v37 = vrot.slane %v321_v30, %v391_v27  ;;  %s974_s19 = sshll.u32 %s1049_s18, 4  ;;  %s975_s19 = int_to_ptr.vmem [resolvable:$false] %s974_s19 }
  0x43   : > { %917 = vset.pattern.permute.xlu1 %v1044_v4  ;;  %916 = vset.pattern.permute.xlu0 %v1044_v4  ;;  %v388_v38 = vrot.slane %v320_v32, %v387_v26  ;;  %v392_v39 = vrot.slane %v320_v32, %v391_v27  ;;  %v346_v40 = vrot.slane %v320_v32, %v345_v28  ;;  %s976_s20 = scalar_lea.vmem %s975_s19, 512 }
  0x44   : > { %456 = vperm.xlu1 %917, %v317_v3   ;;  %452 = vperm.xlu0 %916, %v316_v2   ;;  %v350_v41 = vrot.slane %v320_v32, %v349_v29  ;;  %v1231_v44 = vrot.slane %v471_v34, %v345_v28  ;;  %v1233_v45 = vrot.slane %v475_v35, %v345_v28 }
  0x45   : > { %v1235_v46 = vrot.slane %v513_v36, %v387_v26  ;;  %v1237_v47 = vrot.slane %v517_v37, %v387_v26  ;;  %v1239_v48 = vrot.slane %v388_v38, %v387_v26  ;;  %v1241_v49 = vrot.slane %v392_v39, %v387_v26 }
  0x46   : > { %v1243_v50 = vrot.slane %v346_v40, %v345_v28  ;;  %v1245_v51 = vrot.slane %v350_v41, %v345_v28 }
  0x48   : > { %918 = vset.pattern.permute.xlu1 %v1045_v6  ;;  %920 = vset.pattern.permute.xlu0 %v1042_v0 }
  0x49   : > { %495 = vperm.xlu1 %918, %v316_v2   ;;  %378 = vperm.xlu0 %920, %v318_v5  }
  0x4d   : > { %919 = vset.pattern.permute.xlu1 %v1043_v1  ;;  %923 = vset.pattern.permute.xlu0 %v1046_v7 }
  0x4e   : > { %334 = vperm.xlu1 %919, %v318_v5   ;;  %424 = vperm.xlu0 %923, %v317_v3  }
  0x52   : > { %339 = vperm.xlu1 %919, %v319_v8   ;;  %924 = vset.pattern.permute.xlu0 %v1045_v6 }
  0x53   : > { %499 = vperm.xlu0 %924, %v317_v3  }
  0x56   : > { %921 = vset.pattern.permute.xlu1 %v1042_v0 }
  0x57   : > { %382 = vperm.xlu1 %921, %v319_v8   ;;  %503 = vperm.xlu0 %924, %v318_v5  }
  0x5b   : > { %922 = vset.pattern.permute.xlu1 %v1046_v7  ;;  %928 = vset.pattern.permute.xlu0 %v1047_v9 }
  0x5c   : > { %420 = vperm.xlu1 %922, %v316_v2   ;;  %549 = vperm.xlu0 %928, %v317_v3  }
  0x60   : > { %925 = vset.pattern.permute.xlu1 %v1044_v4  ;;  %553 = vperm.xlu0 %928, %v318_v5  }
  0x61   : > { %460 = vperm.xlu1 %925, %v318_v5  }
  0x64   : > { %931 = vset.pattern.permute.xlu0 %v1043_v1 }
  0x65   : > { %464 = vperm.xlu1 %925, %v319_v8   ;;  %604 = vperm.xlu0 %931, %v601_v11  }
  0x69   : > { %926 = vset.pattern.permute.xlu1 %v1045_v6 }
  0x6a   : > { %507 = vperm.xlu1 %926, %v319_v8  }
  0x6e   : > { %927 = vset.pattern.permute.xlu1 %v1047_v9 }
  0x6f   : > { %545 = vperm.xlu1 %927, %v316_v2  }
  0x73   : > { %929 = vset.pattern.permute.xlu1 %v1046_v7 }
  0x74   : > { %428 = vperm.xlu1 %929, %v318_v5  }
  0x78   : > { %432 = vperm.xlu1 %929, %v319_v8  }
  0x7c   : > { %930 = vset.pattern.permute.xlu1 %v1047_v9 }
  0x7d   : > { %557 = vperm.xlu1 %930, %v319_v8  }
  0xba   : > { %v371_v12 = vpop.permute.xlu1 %370  ;;  %v325_v13 = vpop.permute.xlu0 %324 }
  0xbb   : > { %v403_v61 = vmul.f32 %v1239_v48, %v371_v12  ;;  %v404_v62 = vmul.f32 %v1241_v49, %v371_v12  ;;  %v361_v63 = vmul.f32 %v1243_v50, %v325_v13  ;;  %v362_v0 = vmul.f32 %v1245_v51, %v325_v13 }
  0xbd   : > { %v412_v13 = vadd.f32 %v404_v62, %v362_v0 }
  0xbe   : > { %v375_v14 = vpop.permute.xlu1 %374  ;;  %v330_v16 = vpop.permute.xlu0 %329 }
  0xbf   : > { %v405_v54 = vmul.f32 %v1239_v48, %v375_v14  ;;  %v406_v55 = vmul.f32 %v1241_v49, %v375_v14  ;;  %v363_v56 = vmul.f32 %v1243_v50, %v330_v16  ;;  %v364_v57 = vmul.f32 %v1245_v51, %v330_v16 }
  0xc0   : > { %v411_v16 = vadd.f32 %v403_v61, %v361_v63 }
  0xc1   : > { %v413_v6 = vadd.f32 %v405_v54, %v363_v56  ;;  %v414_v7 = vadd.f32 %v406_v55, %v364_v57  ;;  %v587_v54 = vld [vmem:[%s1195_s11 + $0x18] sm:$0xff]  ;;  %v585_v55 = vld [vmem:[%s1195_s11 + $0x8] sm:$0xff]  ;;  %v584_v56 = vld [vmem:[%s1195_s11] sm:$0xff] }
  0xc2   : > { %v586_v57 = vld [vmem:[%s1195_s11 + $0x10] sm:$0xff] }
  0xc3   : > { %v457_v15 = vpop.permute.xlu1 %456  ;;  %v453_v17 = vpop.permute.xlu0 %452 }
  0xc4   : > { %v488_v59 = vmul.f32 %v1231_v44, %v457_v15  ;;  %v489_v60 = vmul.f32 %v1233_v45, %v457_v15  ;;  %v486_v4 = vmul.f32 %v1231_v44, %v453_v17  ;;  %v487_v5 = vmul.f32 %v1233_v45, %v453_v17 }
  0xc8   : > { %v496_v18 = vpop.permute.xlu1 %495  ;;  %v1219_v20 = vpop.permute.xlu0 %378 }
  0xc9   : > { %v528_v8 = vmul.f32 %v1235_v46, %v496_v18  ;;  %v529_v9 = vmul.f32 %v1237_v47, %v496_v18  ;;  %v407_v22 = vmul.f32 %v1239_v48, %v1219_v20  ;;  %v408_v24 = vmul.f32 %v1241_v49, %v1219_v20 }
  0xcb   : > { %v536_v29 = vadd.f32 %v528_v8, %v486_v4  ;;  %v537_v30 = vadd.f32 %v529_v9, %v487_v5 }
  0xcd   : > { %v1217_v19 = vpop.permute.xlu1 %334  ;;  %v425_v23 = vpop.permute.xlu0 %424 }
  0xce   : > { %v437_v14 = vadd.f32 %v425_v23, %v413_v6  ;;  %v438_v15 = vadd.f32 %v425_v23, %v414_v7  ;;  %v365_v18 = vmul.f32 %v1243_v50, %v1217_v19  ;;  %v366_v23 = vmul.f32 %v1245_v51, %v1217_v19 }
  0xd0   : > { %v446_v32 = vmax.f32 %v438_v15, 0.0  ;;  %v415_v61 = vadd.f32 %v407_v22, %v365_v18 }
  0xd1   : > { %v1221_v21 = vpop.permute.xlu1 %339 }
  0xd2   : > { %v500_v31 = vpop.permute.xlu0 %499  ;;  %v367_v7 = vmul.f32 %v1243_v50, %v1221_v21  ;;  %v368_v8 = vmul.f32 %v1245_v51, %v1221_v21 }
  0xd3   : > { %v530_v52 = vmul.f32 %v1235_v46, %v500_v31  ;;  %v531_v53 = vmul.f32 %v1237_v47, %v500_v31  ;;  %v445_v31 = vmax.f32 %v437_v14, 0.0 }
  0xd5   : > { %v538_v2 = vadd.f32 %v530_v52, %v488_v59  ;;  %v539_v3 = vadd.f32 %v531_v53, %v489_v60 }
  0xd6   : > { %v1223_v25 = vpop.permute.xlu1 %382  ;;  %v504_v42 = vpop.permute.xlu0 %503 }
  0xd7   : > { %v532_v20 = vmul.f32 %v1235_v46, %v504_v42  ;;  %v409_v63 = vmul.f32 %v1239_v48, %v1223_v25  ;;  %v410_v0 = vmul.f32 %v1241_v49, %v1223_v25 }
  0xd9   : > { %v417_v22 = vadd.f32 %v409_v63, %v367_v7 }
  0xdb   : > { %v421_v33 = vpop.permute.xlu1 %420  ;;  %v550_v1 = vpop.permute.xlu0 %549 }
  0xdc   : > { %v562_v10 = vadd.f32 %v550_v1, %v538_v2  ;;  %v563_v11 = vadd.f32 %v550_v1, %v539_v3  ;;  %v435_v17 = vadd.f32 %v421_v33, %v411_v16  ;;  %v436_v26 = vadd.f32 %v421_v33, %v412_v13 }
  0xdd   : > { %v533_v33 = vmul.f32 %v1237_v47, %v504_v42  ;;  %v416_v42 = vadd.f32 %v408_v24, %v366_v23  ;;  %v418_v24 = vadd.f32 %v410_v0, %v368_v8 }
  0xde   : > { %v570_v27 = vmax.f32 %v562_v10, 0.0  ;;  %v571_v28 = vmax.f32 %v563_v11, 0.0  ;;  %v443_v37 = vmax.f32 %v435_v17, 0.0  ;;  %v444_v38 = vmax.f32 %v436_v26, 0.0 }
  0xdf   : > { %v554_v2 = vpop.permute.xlu0 %553 }
  0xe0   : > { %v461_v43 = vpop.permute.xlu1 %460  ;;  %v578_v19 = vadd.f32 %v570_v27, %v445_v31  ;;  %v579_v53 = vadd.f32 %v571_v28, %v446_v32  ;;  %v589_v32 = vld [vmem:[%s1195_s11 + $0x28] sm:$0xff] }
  0xe1   : > { %v490_v39 = vmul.f32 %v1231_v44, %v461_v43  ;;  %v491_v40 = vmul.f32 %v1233_v45, %v461_v43 }
  0xe2   : > { %v595_v4 = vadd.f32 %v587_v54, %v579_v53  ;;  %v594_v6 = vadd.f32 %v586_v57, %v578_v19 }
  0xe3   : > { %v540_v43 = vadd.f32 %v532_v20, %v490_v39  ;;  %v541_v1 = vadd.f32 %v533_v33, %v491_v40  ;;  %v591_v20 = vld [vmem:[%s1195_s11 + $0x38] sm:$0xff]  ;;  %v588_v33 = vld [vmem:[%s1195_s11 + $0x20] sm:$0xff] }
  0xe4   : > { %v1253_v58 = vpop.permute.xlu1 %464  ;;  %v605_v53 = vpop.permute.xlu0 %604 }
  0xe5   : > { %v564_v15 = vadd.f32 %v554_v2, %v540_v43  ;;  %v565_v16 = vadd.f32 %v554_v2, %v541_v1  ;;  %v492_v13 = vmul.f32 %v1231_v44, %v1253_v58  ;;  %v493_v50 = vmul.f32 %v1233_v45, %v1253_v58 }
  0xe7   : > { %v572_v26 = vmax.f32 %v564_v15, 0.0  ;;  %v573_v27 = vmax.f32 %v565_v16, 0.0 }
  0xe9   : > { %v508_v12 = vpop.permute.xlu1 %507 }
  0xea   : > { %v534_v48 = vmul.f32 %v1235_v46, %v508_v12  ;;  %v535_v11 = vmul.f32 %v1237_v47, %v508_v12 }
  0xec   : > { %v542_v12 = vadd.f32 %v534_v48, %v492_v13  ;;  %v543_v17 = vadd.f32 %v535_v11, %v493_v50 }
  0xee   : > { %v546_v34 = vpop.permute.xlu1 %545 }
  0xef   : > { %v560_v35 = vadd.f32 %v546_v34, %v536_v29  ;;  %v561_v36 = vadd.f32 %v546_v34, %v537_v30  ;;  %v590_v34 = vld [vmem:[%s1195_s11 + $0x30] sm:$0xff]  ;;  %s837_s11 = sshll.u32 %s1191_s7, 4 }
  0xf0   : > { %s301_s26 = scalar_lea.vmem [#allocation5], %s837_s11 }
  0xf1   : > { %v568_v41 = vmax.f32 %v560_v35, 0.0  ;;  %v569_v52 = vmax.f32 %v561_v36, 0.0  ;;  %s735_s28 = sshll.u32 %s301_s26, 4  ;;  %s1309_s28 = int_to_ptr.vmem [resolvable:$true] %s735_s28 }
  0xf2   : > { %s970_s16 = scalar_lea.vmem %s1309_s28, 256  ;;  %p977_p10 = scmp.lt.s32.totalorder %s1309_s28, %s975_s19 }
  0xf3   : > { %v576_v59 = vadd.f32 %v568_v41, %v443_v37  ;;  %v429_v60 = vpop.permute.xlu1 %428  ;;  %v577_v62 = vadd.f32 %v569_v52, %v444_v38  ;;  %v600_v52 = vld [vmem:[%s1355_s4] sm:$0xff]  ;;  %p971_p11 = scmp.ne.s32.totalorder %s1309_s28, %s970_s16  ;;  %p978_p1 = scmp.lt.s32.totalorder %s976_s20, %s970_s16 }
  0xf4   : > { %v439_v9 = vadd.f32 %v429_v60, %v415_v61  ;;  %v440_v10 = vadd.f32 %v429_v60, %v416_v42 }
  0xf5   : > { %v593_v3 = vadd.f32 %v585_v55, %v577_v62  ;;  %v592_v5 = vadd.f32 %v584_v56, %v576_v59  ;;  %p972_p13 = pnand %p971_p11, %p1365_p12  ;;  %p979_p3 = por %p978_p1, %p977_p10 }
  0xf6   : > { %v447_v21 = vmax.f32 %v439_v9, 0.0  ;;  %v448_v51 = vmax.f32 %v440_v10, 0.0 }
  0xf7   : > { %v433_v25 = vpop.permute.xlu1 %432  ;;  %v850_v49 = vpack.c.bf16 %v595_v4, %v593_v3  ;;  %v852_v14 = vpack.c.bf16 %v594_v6, %v592_v5  ;;  %p973_p4 = pneg %p972_p13 }
  0xf8   : > { %v441_v46 = vadd.f32 %v433_v25, %v417_v22  ;;  %v442_v47 = vadd.f32 %v433_v25, %v418_v24  ;;  %v580_v45 = vadd.f32 %v572_v26, %v447_v21  ;;  %v581_v58 = vadd.f32 %v573_v27, %v448_v51 }
  0xf9   : > { %851 = vmatprep.subr.bf16.mxu0 %v850_v49  ;;  %p980_p5 = pnand %p979_p3, %p973_p4 }
  0xfa   : > { %853 = vmatpush1.bf16.msra.mxu0 %v852_v14  ;;  %v449_v30 = vmax.f32 %v441_v46, 0.0  ;;  %v450_v18 = vmax.f32 %v442_v47, 0.0  ;;  %v597_v39 = vadd.f32 %v589_v32, %v581_v58  ;;  %v596_v40 = vadd.f32 %v588_v33, %v580_v45 }
  0xfc   : > { %v558_v44 = vpop.permute.xlu1 %557 }
  0xfd   : > { %v566_v28 = vadd.f32 %v558_v44, %v542_v12  ;;  %v567_v29 = vadd.f32 %v558_v44, %v543_v17 }
  0xff   : > { %v574_v23 = vmax.f32 %v566_v28, 0.0  ;;  %v575_v31 = vmax.f32 %v567_v29, 0.0 }
 0x101   : > { %v582_v35 = vadd.f32 %v574_v23, %v449_v30  ;;  %v583_v36 = vadd.f32 %v575_v31, %v450_v18 }
 0x103   : > { %v598_v37 = vadd.f32 %v590_v34, %v582_v35  ;;  %v599_v38 = vadd.f32 %v591_v20, %v583_v36 }
 0x105   : > { %v854_v19 = vpack.c.bf16 %v599_v38, %v597_v39  ;;  %v856_v41 = vpack.c.bf16 %v598_v37, %v596_v40 }
 0x107   : > { %855 = vmatprep.subr.bf16.mxu0 %v854_v19 }
 0x108   : > { %857 = vmatpush1.bf16.msra.mxu0 %v856_v41 }
 0x10b   : > { %842 = vmatmul.mubr.msk.f32.vlgmr.msra.gmra.mrb[0].mxu0 %vm607_vm0, %v600_v52 }
 0x1de   : > { %v677_v54 = vpop.f32.mrb[0].mxu0 }
 0x1df   : > { %v678_v55 = vadd.f32 %v677_v54, %v605_v53  ;;  %v679_v56 = vpop.f32.mrb[1].mxu0 }
 0x1e0   : > { %v680_v57 = vadd.f32 %v679_v56, %v605_v53 }
 0x1e1   : > { %v688_v59 = vand.u32 2147483647, %v678_v55  ;;  %v682_v25 = vmax.f32 %v678_v55, 0.0  ;;  %vm684_vm3 = vcmp.ne.f32.partialorder %v678_v55, %v678_v55 }
 0x1e2   : > { %v689_v60 = vand.u32 2147483647, %v680_v57  ;;  %v683_v16 = vmax.f32 %v680_v57, 0.0  ;;  %vm685_vm4 = vcmp.ne.f32.partialorder %v680_v57, %v680_v57 }
 0x1e3   : > { %v690_v61 = vsub.f32 0.0, %v688_v59 }
 0x1e4   : > { %v691_v42 = vsub.f32 0.0, %v689_v60 }
 0x1e5   : > { %v692_v62 = vmul.f32 1.442695, %v690_v61 }
 0x1e6   : > { %v694_v63 = vmul.f32 1.442695, %v691_v42 }
 0x1e7   : > { %932 = vpow2.f32 %v692_v62 }
 0x1e8   : > { %934 = vpow2.f32 %v694_v63 }
 0x1f1   : > { %v933_v0 = vpop.eup %932 }
 0x1f2   : > { %v935_v43 = vpop.eup %934  ;;  %v696_v1 = vadd.f32 1.0, %v933_v0  ;;  %v699_v3 = vmul.f32 -0.5, %v933_v0  ;;  %v702_v6 = vand.u32 2147483647, %v933_v0 }
 0x1f3   : > { %v705_v2 = vadd.f32 1.0, %v935_v43  ;;  %v708_v4 = vmul.f32 -0.5, %v935_v43  ;;  %v711_v8 = vand.u32 2147483647, %v935_v43 }
 0x1f4   : > { %936 = vlog2.f32 %v696_v1  ;;  %v700_v5 = vadd.f32 1.0, %v699_v3  ;;  %vm703_vm1 = vcmp.lt.f32.partialorder %v702_v6, 0.0004427343 }
 0x1f5   : > { %938 = vlog2.f32 %v705_v2  ;;  %v709_v7 = vadd.f32 1.0, %v708_v4  ;;  %vm712_vm2 = vcmp.lt.f32.partialorder %v711_v8, 0.0004427343 }
 0x1f6   : > { %v701_v11 = vmul.f32 %v933_v0, %v700_v5 }
 0x1f7   : > { %v710_v14 = vmul.f32 %v935_v43, %v709_v7 }
 0x1fe   : > { %v937_v9 = vpop.eup %936 }
 0x1ff   : > { %v939_v10 = vpop.eup %938  ;;  %v698_v48 = vmul.f32 0.6931472, %v937_v9 }
 0x200   : > { %v707_v49 = vmul.f32 0.6931472, %v939_v10 }
 0x201   : > { %v704_v15 = vsel %vm703_vm1, %v701_v11, %v698_v48 }
 0x202   : > { %v714_v13 = vadd.f32 %v704_v15, %v682_v25  ;;  %v713_v50 = vsel %vm712_vm2, %v710_v14, %v707_v49 }
 0x203   : > { %v715_v22 = vadd.f32 %v713_v50, %v683_v16 }
 0x204   : > { %v716_v24 = vsel %vm684_vm3, %v678_v55, %v714_v13 }
 0x205   : > { %v717_v21 = vsel %vm685_vm4, %v680_v57, %v715_v22  ;;  %718 = vst [vmem:[%s301_s26] sm:$0xff] %v716_v24 }
 0x206   : > { %719 = vst [vmem:[%s301_s26 + $0x8] sm:$0xff] %v717_v21 }
 0x207   : > { %983 = shalt.err (!%p980_p5)
}
 0x208   : > { %s984_s7 = scalar_lea.hbm %s1307_s13, 256  ;;  %s988_s15 = scalar_lea.hbm %s1357_s6, 512 }
 0x209   : > { %p985_p7 = scmp.ne.s32.totalorder %s1307_s13, %s984_s7  ;;  %p989_p0 = scmp.lt.u32.totalorder %s1307_s13, %s1357_s6 }
 0x20a   : > { %p990_p2 = scmp.lt.u32.totalorder %s988_s15, %s984_s7  ;;  %p992_p11 = scmp.lt.u32.totalorder %s984_s7, %s1307_s13 }
 0x20b   : > { %p986_p8 = pnand %p985_p7, %p1365_p12 }
 0x20c   : > { %p991_p6 = por %p990_p2, %p989_p0 }
 0x20d   : > { %p987_p9 = pneg %p986_p8 }
 0x20e   : > { %p993_p13 = por %p992_p11, %p991_p6 }
 0x210   : > { %p994_p4 = pnand %p993_p13, %p987_p9 }
 0x212   : > { %997 = shalt.err (!%p994_p4)
}
 0x213   : > { %860 = dma.vmem_to_hbm [thread:$0]  (%p1365_p12), %s1309_s28, 256, %s1307_s13, %s721_s25  }
 0x214 PF: > { %s747_s26 = sand.u32 1, %s1024_s21   ;;  %p1366_p10 = scmp.ne.s32.totalorder %s1362_s10, 0 }
 0x215   : > { %p1367_p1 = scmp.ge.s32.totalorder %s1036_s24, 2  ;;  %s748_s29 = scalar_lea.sflag [#allocation4], %s747_s26 }
 0x217   : > { %p867_p3 = pnand %p1367_p1, %p1366_p10 }
 0x219   : > { %1019 = dma.done.wait (!%p867_p3), %s748_s29, 256  }
 0x21a   : > { %1021 = vsyncadd (!%p867_p3), %s748_s29, 4294967040  ;;  %p19_p5 = scmp.ge.s32.totalorder %s1110_s27, 4   ;;  %s1368_s21 = smov %s1028_s22 }
 0x21b   : > { %s1369_s22 = smov %s1032_s23  ;;  %s1370_s23 = smov %s1122_s30 }
 0x21c   : > { %s1371_s24 = smov %s1110_s27  ;;  %21 = sbr.rel (!%p19_p5) target bundleno = 5 (0x5), region = 95 }
 0x223   :  { %753 = vsyncpa [#allocation3], 1 }
 0x224   :  { %755 = vsyncpa [#allocation3 + $0x1], 1 }
 0x225   :  { %756 = vsyncpa [#allocation4], 1 }
 0x226   :  { %758 = vsyncpa [#allocation4 + $0x1], 1 }

</bundles_post_ra>
